<compile_context>
chip_gen: v5e
topology: v5e:2x2
jax: 0.10.0
libtpu: 0.0.40
codegen_flags: <defaults>
</compile_context>

<pallas_src>
import jax
import jax.numpy as jnp
from jax.experimental import pallas as pl
from jax.experimental.pallas import tpu as pltpu


# ----------------------------- Pallas kernel -------------------------------
def gmm_log_prob_kernel(c_ref, a_ref, loc_ref, x_ref, out_ref):
    """out[r, l] = logsumexp_m( c[m,l] + a[m,l] * (x[r,l] - loc[m,l])**2 )."""
    x = x_ref[...]                        # (TB, L) f32
    c = c_ref[...]                        # (M, L)  f32
    a = a_ref[...]                        # (M, L)  f32
    loc = loc_ref[...]                    # (M, L)  f32
    M = c.shape[0]

    def component(m):                     # 2-D (TB, L) per-component log term
        d = x - loc[m:m + 1, :]
        return c[m:m + 1, :] + a[m:m + 1, :] * (d * d)

    # Pass 1: running max over the M mixture components (2-D state only).
    m_i = component(0)
    for m in range(1, M):
        m_i = jnp.maximum(m_i, component(m))

    # Pass 2: sum of exp(t_m - max); only M exps per output element (EUP).
    s = jnp.exp(component(0) - m_i)
    for m in range(1, M):
        s = s + jnp.exp(component(m) - m_i)

    out_ref[...] = m_i + jnp.log(s)


# ------------------------------ Wrappers ------------------------------------
_MAX_ROWS_PER_TILE = 256          # keeps live 2-D f32 state near the 64-vreg budget
_HALF_LOG_2PI = 0.9189385332046727  # 0.5 * log(2*pi)


def custom_prior_forward(logits, mean, logvar):
    """Mirrors CustomPrior.forward: returns GMM params (logits, locs, scales)."""
    return logits, mean, jnp.exp(logvar)


@jax.jit
def gmm_log_prob(x, logits, locs, scales):
    """GMM.log_prob(x) via a Pallas TPU kernel.  x: [B, Z] -> out: [B, Z]."""
    x = x.astype(jnp.float32)
    logits = logits.astype(jnp.float32)
    locs = locs.astype(jnp.float32)
    scales = scales.astype(jnp.float32)

    B, Z = x.shape
    M = locs.shape[0]

    # Hoist all grid-invariant parameter math out of the kernel.
    log_w = jax.nn.log_softmax(logits, axis=0)                       # (M,)
    a = -0.5 / (scales * scales)                                     # (M, Z)
    c = log_w[:, None] - jnp.log(scales) - _HALF_LOG_2PI             # (M, Z)

    # Lane-dense layout: fold `fold` batch rows into the 128-lane axis.
    if Z % 128 == 0:
        fold = 1
    elif 128 % Z == 0:
        fold = 128 // Z
    else:
        fold = 1  # TODO(synk): awkward Z -> keep full-width (=Z) last dim; still correct.
    L = fold * Z

    # Pad batch so it folds evenly (padded rows are scored then discarded).
    B_r = -(-B // fold) * fold
    if B_r != B:
        x = jnp.pad(x, ((0, B_r - B), (0, 0)))
    xf = x.reshape(B_r // fold, L)
    Bf = B_r // fold

    # Batch tile: one big tile for small batches, else 256-row tiles; pad the
    # folded batch up to a multiple of the tile (no silently dropped rows).
    tb = Bf if Bf <= _MAX_ROWS_PER_TILE else _MAX_ROWS_PER_TILE
    Bf_pad = -(-Bf // tb) * tb
    if Bf_pad != Bf:
        xf = jnp.pad(xf, ((0, Bf_pad - Bf), (0, 0)))

    def tile_param(p):                                               # (M, Z) -> (M, L)
        return jnp.tile(p, (1, fold))

    out = pl.pallas_call(
        gmm_log_prob_kernel,
        out_shape=jax.ShapeDtypeStruct((Bf_pad, L), jnp.float32),
        grid=(Bf_pad // tb,),
        in_specs=[
            pl.BlockSpec((M, L), lambda i: (0, 0)),     # c    (replicated)
            pl.BlockSpec((M, L), lambda i: (0, 0)),     # a    (replicated)
            pl.BlockSpec((M, L), lambda i: (0, 0)),     # loc  (replicated)
            pl.BlockSpec((tb, L), lambda i: (i, 0)),    # x    (tiled over batch)
        ],
        out_specs=pl.BlockSpec((tb, L), lambda i: (i, 0)),
        compiler_params=pltpu.CompilerParams(
            dimension_semantics=("parallel",)),
    )(tile_param(c), tile_param(a), tile_param(locs), xf)

    # Undo folding / padding.
    return out.reshape(Bf_pad * fold, Z)[:B]


def gmm_log_prob_ref(x, logits, locs, scales):
    """Pure-JAX reference matching torch GMM.log_prob exactly."""
    log_w = jax.nn.log_softmax(logits, axis=0)[None, :, None]        # (1, M, 1)
    var = scales * scales
    nlp = (-((x[:, None, :] - locs[None]) ** 2) / (2.0 * var[None])
           - jnp.log(scales)[None]
           - 0.5 * jnp.log(2.0 * jnp.pi))                            # (B, M, Z)
    return jax.nn.logsumexp(log_w + nlp, axis=1)                     # (B, Z)


def gmm_sample(key, size, logits, locs, scales):
    """Mirrors CustomPrior.sample / GMM.rsample (stochastic -> plain JAX glue)."""
    # TODO(synk): categorical + normal sampling is RNG glue, not a Pallas hot path.
    k_cat, k_norm = jax.random.split(key)
    cat = jax.random.categorical(k_cat, logits, shape=(size,))       # (size,)
    loc = locs[cat]                                                  # (size, Z)
    scale = scales[cat]
    return loc + scale * jax.random.normal(k_norm, loc.shape)


# -------------------------------- Main ---------------------------------------
if __name__ == "__main__":
    Z = 32        # latent dim (z=32 in the module)
    M = 10        # mixture components
    B = 16        # batch of latent samples to score

    key = jax.random.PRNGKey(0)
    k_x, k_logits, k_mean, k_logvar = jax.random.split(key, 4)

    # Parameters: same shapes as CustomPrior.__init__ (zeros there); use small
    # deterministic random values so the kernel computes something non-trivial.
    logits = 0.1 * jax.random.normal(k_logits, (M,), jnp.float32)
    mean = 0.5 * jax.random.normal(k_mean, (M, Z), jnp.float32)
    logvar = 0.2 * jax.random.normal(k_logvar, (M, Z), jnp.float32)

    x = jax.random.normal(k_x, (B, Z), jnp.float32)

    # forward(): build the distribution parameters (scales = exp(logvar)).
    g_logits, g_locs, g_scales = custom_prior_forward(logits, mean, logvar)

    # Hot path: GMM.log_prob via the Pallas kernel.
    out = gmm_log_prob(x, g_logits, g_locs, g_scales)
    out = jax.block_until_ready(out)

    ref = gmm_log_prob_ref(x, g_logits, g_locs, g_scales)
    assert out.shape == (B, Z)
    assert jnp.allclose(out, ref, atol=2e-5, rtol=2e-5), (
        f"max abs err = {jnp.max(jnp.abs(out - ref))}")

    # Sampling path (plain-JAX glue), just to exercise CustomPrior.sample.
    samp = jax.block_until_ready(
        gmm_sample(jax.random.PRNGKey(1), 4, g_logits, g_locs, g_scales))
    assert samp.shape == (4, Z)

    print("KERNEL_OK")
</pallas_src>

<mosaic_0001>
module attributes {stable_mosaic.version = 11 : i64} {
  func.func @gmm_log_prob_kernel(%arg0: i32, %arg1: memref<10x128xf32, #tpu.memory_space<vmem>>, %arg2: memref<10x128xf32, #tpu.memory_space<vmem>>, %arg3: memref<10x128xf32, #tpu.memory_space<vmem>>, %arg4: memref<4x128xf32, #tpu.memory_space<vmem>>, %arg5: memref<4x128xf32, #tpu.memory_space<vmem>>) attributes {dimension_semantics = [#tpu.dimension_semantics<parallel>], iteration_bounds = array<i64: 1>, scalar_prefetch = 0 : i64, scratch_operands = 0 : i64, tpu.core_type = #tpu.core_type<tc>, window_params = [{pipeline_mode = #tpu.pipeline_mode<synchronous>, transform_indices = @transform_0, window_bounds = array<i64: 10, 128>}, {pipeline_mode = #tpu.pipeline_mode<synchronous>, transform_indices = @transform_1, window_bounds = array<i64: 10, 128>}, {pipeline_mode = #tpu.pipeline_mode<synchronous>, transform_indices = @transform_2, window_bounds = array<i64: 10, 128>}, {transform_indices = @transform_3, window_bounds = array<i64: 4, 128>}, {transform_indices = @transform_4, window_bounds = array<i64: 4, 128>}]} {
    %c0 = arith.constant 0 : index
    %c0_0 = arith.constant 0 : index
    %0 = vector.load %arg4[%c0, %c0_0] : memref<4x128xf32, #tpu.memory_space<vmem>>, vector<4x128xf32>
    %c0_1 = arith.constant 0 : index
    %c0_2 = arith.constant 0 : index
    %1 = vector.load %arg1[%c0_1, %c0_2] : memref<10x128xf32, #tpu.memory_space<vmem>>, vector<10x128xf32>
    %c0_3 = arith.constant 0 : index
    %c0_4 = arith.constant 0 : index
    %2 = vector.load %arg2[%c0_3, %c0_4] : memref<10x128xf32, #tpu.memory_space<vmem>>, vector<10x128xf32>
    %c0_5 = arith.constant 0 : index
    %c0_6 = arith.constant 0 : index
    %3 = vector.load %arg3[%c0_5, %c0_6] : memref<10x128xf32, #tpu.memory_space<vmem>>, vector<10x128xf32>
    %4 = vector.extract_strided_slice %3 {offsets = [0, 0], sizes = [1, 128], strides = [1, 1]} : vector<10x128xf32> to vector<1x128xf32>
    %5 = vector.broadcast %4 : vector<1x128xf32> to vector<4x128xf32>
    %6 = arith.subf %0, %5 : vector<4x128xf32>
    %7 = vector.extract_strided_slice %1 {offsets = [0, 0], sizes = [1, 128], strides = [1, 1]} : vector<10x128xf32> to vector<1x128xf32>
    %8 = vector.extract_strided_slice %2 {offsets = [0, 0], sizes = [1, 128], strides = [1, 1]} : vector<10x128xf32> to vector<1x128xf32>
    %9 = arith.mulf %6, %6 : vector<4x128xf32>
    %10 = vector.broadcast %8 : vector<1x128xf32> to vector<4x128xf32>
    %11 = arith.mulf %10, %9 : vector<4x128xf32>
    %12 = vector.broadcast %7 : vector<1x128xf32> to vector<4x128xf32>
    %13 = arith.addf %12, %11 : vector<4x128xf32>
    %14 = vector.extract_strided_slice %3 {offsets = [1, 0], sizes = [1, 128], strides = [1, 1]} : vector<10x128xf32> to vector<1x128xf32>
    %15 = vector.broadcast %14 : vector<1x128xf32> to vector<4x128xf32>
    %16 = arith.subf %0, %15 : vector<4x128xf32>
    %17 = vector.extract_strided_slice %1 {offsets = [1, 0], sizes = [1, 128], strides = [1, 1]} : vector<10x128xf32> to vector<1x128xf32>
    %18 = vector.extract_strided_slice %2 {offsets = [1, 0], sizes = [1, 128], strides = [1, 1]} : vector<10x128xf32> to vector<1x128xf32>
    %19 = arith.mulf %16, %16 : vector<4x128xf32>
    %20 = vector.broadcast %18 : vector<1x128xf32> to vector<4x128xf32>
    %21 = arith.mulf %20, %19 : vector<4x128xf32>
    %22 = vector.broadcast %17 : vector<1x128xf32> to vector<4x128xf32>
    %23 = arith.addf %22, %21 : vector<4x128xf32>
    %24 = arith.maximumf %13, %23 : vector<4x128xf32>
    %25 = vector.extract_strided_slice %3 {offsets = [2, 0], sizes = [1, 128], strides = [1, 1]} : vector<10x128xf32> to vector<1x128xf32>
    %26 = vector.broadcast %25 : vector<1x128xf32> to vector<4x128xf32>
    %27 = arith.subf %0, %26 : vector<4x128xf32>
    %28 = vector.extract_strided_slice %1 {offsets = [2, 0], sizes = [1, 128], strides = [1, 1]} : vector<10x128xf32> to vector<1x128xf32>
    %29 = vector.extract_strided_slice %2 {offsets = [2, 0], sizes = [1, 128], strides = [1, 1]} : vector<10x128xf32> to vector<1x128xf32>
    %30 = arith.mulf %27, %27 : vector<4x128xf32>
    %31 = vector.broadcast %29 : vector<1x128xf32> to vector<4x128xf32>
    %32 = arith.mulf %31, %30 : vector<4x128xf32>
    %33 = vector.broadcast %28 : vector<1x128xf32> to vector<4x128xf32>
    %34 = arith.addf %33, %32 : vector<4x128xf32>
    %35 = arith.maximumf %24, %34 : vector<4x128xf32>
    %36 = vector.extract_strided_slice %3 {offsets = [3, 0], sizes = [1, 128], strides = [1, 1]} : vector<10x128xf32> to vector<1x128xf32>
    %37 = vector.broadcast %36 : vector<1x128xf32> to vector<4x128xf32>
    %38 = arith.subf %0, %37 : vector<4x128xf32>
    %39 = vector.extract_strided_slice %1 {offsets = [3, 0], sizes = [1, 128], strides = [1, 1]} : vector<10x128xf32> to vector<1x128xf32>
    %40 = vector.extract_strided_slice %2 {offsets = [3, 0], sizes = [1, 128], strides = [1, 1]} : vector<10x128xf32> to vector<1x128xf32>
    %41 = arith.mulf %38, %38 : vector<4x128xf32>
    %42 = vector.broadcast %40 : vector<1x128xf32> to vector<4x128xf32>
    %43 = arith.mulf %42, %41 : vector<4x128xf32>
    %44 = vector.broadcast %39 : vector<1x128xf32> to vector<4x128xf32>
    %45 = arith.addf %44, %43 : vector<4x128xf32>
    %46 = arith.maximumf %35, %45 : vector<4x128xf32>
    %47 = vector.extract_strided_slice %3 {offsets = [4, 0], sizes = [1, 128], strides = [1, 1]} : vector<10x128xf32> to vector<1x128xf32>
    %48 = vector.broadcast %47 : vector<1x128xf32> to vector<4x128xf32>
    %49 = arith.subf %0, %48 : vector<4x128xf32>
    %50 = vector.extract_strided_slice %1 {offsets = [4, 0], sizes = [1, 128], strides = [1, 1]} : vector<10x128xf32> to vector<1x128xf32>
    %51 = vector.extract_strided_slice %2 {offsets = [4, 0], sizes = [1, 128], strides = [1, 1]} : vector<10x128xf32> to vector<1x128xf32>
    %52 = arith.mulf %49, %49 : vector<4x128xf32>
    %53 = vector.broadcast %51 : vector<1x128xf32> to vector<4x128xf32>
    %54 = arith.mulf %53, %52 : vector<4x128xf32>
    %55 = vector.broadcast %50 : vector<1x128xf32> to vector<4x128xf32>
    %56 = arith.addf %55, %54 : vector<4x128xf32>
    %57 = arith.maximumf %46, %56 : vector<4x128xf32>
    %58 = vector.extract_strided_slice %3 {offsets = [5, 0], sizes = [1, 128], strides = [1, 1]} : vector<10x128xf32> to vector<1x128xf32>
    %59 = vector.broadcast %58 : vector<1x128xf32> to vector<4x128xf32>
    %60 = arith.subf %0, %59 : vector<4x128xf32>
    %61 = vector.extract_strided_slice %1 {offsets = [5, 0], sizes = [1, 128], strides = [1, 1]} : vector<10x128xf32> to vector<1x128xf32>
    %62 = vector.extract_strided_slice %2 {offsets = [5, 0], sizes = [1, 128], strides = [1, 1]} : vector<10x128xf32> to vector<1x128xf32>
    %63 = arith.mulf %60, %60 : vector<4x128xf32>
    %64 = vector.broadcast %62 : vector<1x128xf32> to vector<4x128xf32>
    %65 = arith.mulf %64, %63 : vector<4x128xf32>
    %66 = vector.broadcast %61 : vector<1x128xf32> to vector<4x128xf32>
    %67 = arith.addf %66, %65 : vector<4x128xf32>
    %68 = arith.maximumf %57, %67 : vector<4x128xf32>
    %69 = vector.extract_strided_slice %3 {offsets = [6, 0], sizes = [1, 128], strides = [1, 1]} : vector<10x128xf32> to vector<1x128xf32>
    %70 = vector.broadcast %69 : vector<1x128xf32> to vector<4x128xf32>
    %71 = arith.subf %0, %70 : vector<4x128xf32>
    %72 = vector.extract_strided_slice %1 {offsets = [6, 0], sizes = [1, 128], strides = [1, 1]} : vector<10x128xf32> to vector<1x128xf32>
    %73 = vector.extract_strided_slice %2 {offsets = [6, 0], sizes = [1, 128], strides = [1, 1]} : vector<10x128xf32> to vector<1x128xf32>
    %74 = arith.mulf %71, %71 : vector<4x128xf32>
    %75 = vector.broadcast %73 : vector<1x128xf32> to vector<4x128xf32>
    %76 = arith.mulf %75, %74 : vector<4x128xf32>
    %77 = vector.broadcast %72 : vector<1x128xf32> to vector<4x128xf32>
    %78 = arith.addf %77, %76 : vector<4x128xf32>
    %79 = arith.maximumf %68, %78 : vector<4x128xf32>
    %80 = vector.extract_strided_slice %3 {offsets = [7, 0], sizes = [1, 128], strides = [1, 1]} : vector<10x128xf32> to vector<1x128xf32>
    %81 = vector.broadcast %80 : vector<1x128xf32> to vector<4x128xf32>
    %82 = arith.subf %0, %81 : vector<4x128xf32>
    %83 = vector.extract_strided_slice %1 {offsets = [7, 0], sizes = [1, 128], strides = [1, 1]} : vector<10x128xf32> to vector<1x128xf32>
    %84 = vector.extract_strided_slice %2 {offsets = [7, 0], sizes = [1, 128], strides = [1, 1]} : vector<10x128xf32> to vector<1x128xf32>
    %85 = arith.mulf %82, %82 : vector<4x128xf32>
    %86 = vector.broadcast %84 : vector<1x128xf32> to vector<4x128xf32>
    %87 = arith.mulf %86, %85 : vector<4x128xf32>
    %88 = vector.broadcast %83 : vector<1x128xf32> to vector<4x128xf32>
    %89 = arith.addf %88, %87 : vector<4x128xf32>
    %90 = arith.maximumf %79, %89 : vector<4x128xf32>
    %91 = vector.extract_strided_slice %3 {offsets = [8, 0], sizes = [1, 128], strides = [1, 1]} : vector<10x128xf32> to vector<1x128xf32>
    %92 = vector.broadcast %91 : vector<1x128xf32> to vector<4x128xf32>
    %93 = arith.subf %0, %92 : vector<4x128xf32>
    %94 = vector.extract_strided_slice %1 {offsets = [8, 0], sizes = [1, 128], strides = [1, 1]} : vector<10x128xf32> to vector<1x128xf32>
    %95 = vector.extract_strided_slice %2 {offsets = [8, 0], sizes = [1, 128], strides = [1, 1]} : vector<10x128xf32> to vector<1x128xf32>
    %96 = arith.mulf %93, %93 : vector<4x128xf32>
    %97 = vector.broadcast %95 : vector<1x128xf32> to vector<4x128xf32>
    %98 = arith.mulf %97, %96 : vector<4x128xf32>
    %99 = vector.broadcast %94 : vector<1x128xf32> to vector<4x128xf32>
    %100 = arith.addf %99, %98 : vector<4x128xf32>
    %101 = arith.maximumf %90, %100 : vector<4x128xf32>
    %102 = vector.extract_strided_slice %3 {offsets = [9, 0], sizes = [1, 128], strides = [1, 1]} : vector<10x128xf32> to vector<1x128xf32>
    %103 = vector.broadcast %102 : vector<1x128xf32> to vector<4x128xf32>
    %104 = arith.subf %0, %103 : vector<4x128xf32>
    %105 = vector.extract_strided_slice %1 {offsets = [9, 0], sizes = [1, 128], strides = [1, 1]} : vector<10x128xf32> to vector<1x128xf32>
    %106 = vector.extract_strided_slice %2 {offsets = [9, 0], sizes = [1, 128], strides = [1, 1]} : vector<10x128xf32> to vector<1x128xf32>
    %107 = arith.mulf %104, %104 : vector<4x128xf32>
    %108 = vector.broadcast %106 : vector<1x128xf32> to vector<4x128xf32>
    %109 = arith.mulf %108, %107 : vector<4x128xf32>
    %110 = vector.broadcast %105 : vector<1x128xf32> to vector<4x128xf32>
    %111 = arith.addf %110, %109 : vector<4x128xf32>
    %112 = arith.maximumf %101, %111 : vector<4x128xf32>
    %113 = vector.extract_strided_slice %3 {offsets = [0, 0], sizes = [1, 128], strides = [1, 1]} : vector<10x128xf32> to vector<1x128xf32>
    %114 = vector.broadcast %113 : vector<1x128xf32> to vector<4x128xf32>
    %115 = arith.subf %0, %114 : vector<4x128xf32>
    %116 = vector.extract_strided_slice %1 {offsets = [0, 0], sizes = [1, 128], strides = [1, 1]} : vector<10x128xf32> to vector<1x128xf32>
    %117 = vector.extract_strided_slice %2 {offsets = [0, 0], sizes = [1, 128], strides = [1, 1]} : vector<10x128xf32> to vector<1x128xf32>
    %118 = arith.mulf %115, %115 : vector<4x128xf32>
    %119 = vector.broadcast %117 : vector<1x128xf32> to vector<4x128xf32>
    %120 = arith.mulf %119, %118 : vector<4x128xf32>
    %121 = vector.broadcast %116 : vector<1x128xf32> to vector<4x128xf32>
    %122 = arith.addf %121, %120 : vector<4x128xf32>
    %123 = arith.subf %122, %112 : vector<4x128xf32>
    %124 = math.exp %123 : vector<4x128xf32>
    %125 = vector.extract_strided_slice %3 {offsets = [1, 0], sizes = [1, 128], strides = [1, 1]} : vector<10x128xf32> to vector<1x128xf32>
    %126 = vector.broadcast %125 : vector<1x128xf32> to vector<4x128xf32>
    %127 = arith.subf %0, %126 : vector<4x128xf32>
    %128 = vector.extract_strided_slice %1 {offsets = [1, 0], sizes = [1, 128], strides = [1, 1]} : vector<10x128xf32> to vector<1x128xf32>
    %129 = vector.extract_strided_slice %2 {offsets = [1, 0], sizes = [1, 128], strides = [1, 1]} : vector<10x128xf32> to vector<1x128xf32>
    %130 = arith.mulf %127, %127 : vector<4x128xf32>
    %131 = vector.broadcast %129 : vector<1x128xf32> to vector<4x128xf32>
    %132 = arith.mulf %131, %130 : vector<4x128xf32>
    %133 = vector.broadcast %128 : vector<1x128xf32> to vector<4x128xf32>
    %134 = arith.addf %133, %132 : vector<4x128xf32>
    %135 = arith.subf %134, %112 : vector<4x128xf32>
    %136 = math.exp %135 : vector<4x128xf32>
    %137 = arith.addf %124, %136 : vector<4x128xf32>
    %138 = vector.extract_strided_slice %3 {offsets = [2, 0], sizes = [1, 128], strides = [1, 1]} : vector<10x128xf32> to vector<1x128xf32>
    %139 = vector.broadcast %138 : vector<1x128xf32> to vector<4x128xf32>
    %140 = arith.subf %0, %139 : vector<4x128xf32>
    %141 = vector.extract_strided_slice %1 {offsets = [2, 0], sizes = [1, 128], strides = [1, 1]} : vector<10x128xf32> to vector<1x128xf32>
    %142 = vector.extract_strided_slice %2 {offsets = [2, 0], sizes = [1, 128], strides = [1, 1]} : vector<10x128xf32> to vector<1x128xf32>
    %143 = arith.mulf %140, %140 : vector<4x128xf32>
    %144 = vector.broadcast %142 : vector<1x128xf32> to vector<4x128xf32>
    %145 = arith.mulf %144, %143 : vector<4x128xf32>
    %146 = vector.broadcast %141 : vector<1x128xf32> to vector<4x128xf32>
    %147 = arith.addf %146, %145 : vector<4x128xf32>
    %148 = arith.subf %147, %112 : vector<4x128xf32>
    %149 = math.exp %148 : vector<4x128xf32>
    %150 = arith.addf %137, %149 : vector<4x128xf32>
    %151 = vector.extract_strided_slice %3 {offsets = [3, 0], sizes = [1, 128], strides = [1, 1]} : vector<10x128xf32> to vector<1x128xf32>
    %152 = vector.broadcast %151 : vector<1x128xf32> to vector<4x128xf32>
    %153 = arith.subf %0, %152 : vector<4x128xf32>
    %154 = vector.extract_strided_slice %1 {offsets = [3, 0], sizes = [1, 128], strides = [1, 1]} : vector<10x128xf32> to vector<1x128xf32>
    %155 = vector.extract_strided_slice %2 {offsets = [3, 0], sizes = [1, 128], strides = [1, 1]} : vector<10x128xf32> to vector<1x128xf32>
    %156 = arith.mulf %153, %153 : vector<4x128xf32>
    %157 = vector.broadcast %155 : vector<1x128xf32> to vector<4x128xf32>
    %158 = arith.mulf %157, %156 : vector<4x128xf32>
    %159 = vector.broadcast %154 : vector<1x128xf32> to vector<4x128xf32>
    %160 = arith.addf %159, %158 : vector<4x128xf32>
    %161 = arith.subf %160, %112 : vector<4x128xf32>
    %162 = math.exp %161 : vector<4x128xf32>
    %163 = arith.addf %150, %162 : vector<4x128xf32>
    %164 = vector.extract_strided_slice %3 {offsets = [4, 0], sizes = [1, 128], strides = [1, 1]} : vector<10x128xf32> to vector<1x128xf32>
    %165 = vector.broadcast %164 : vector<1x128xf32> to vector<4x128xf32>
    %166 = arith.subf %0, %165 : vector<4x128xf32>
    %167 = vector.extract_strided_slice %1 {offsets = [4, 0], sizes = [1, 128], strides = [1, 1]} : vector<10x128xf32> to vector<1x128xf32>
    %168 = vector.extract_strided_slice %2 {offsets = [4, 0], sizes = [1, 128], strides = [1, 1]} : vector<10x128xf32> to vector<1x128xf32>
    %169 = arith.mulf %166, %166 : vector<4x128xf32>
    %170 = vector.broadcast %168 : vector<1x128xf32> to vector<4x128xf32>
    %171 = arith.mulf %170, %169 : vector<4x128xf32>
    %172 = vector.broadcast %167 : vector<1x128xf32> to vector<4x128xf32>
    %173 = arith.addf %172, %171 : vector<4x128xf32>
    %174 = arith.subf %173, %112 : vector<4x128xf32>
    %175 = math.exp %174 : vector<4x128xf32>
    %176 = arith.addf %163, %175 : vector<4x128xf32>
    %177 = vector.extract_strided_slice %3 {offsets = [5, 0], sizes = [1, 128], strides = [1, 1]} : vector<10x128xf32> to vector<1x128xf32>
    %178 = vector.broadcast %177 : vector<1x128xf32> to vector<4x128xf32>
    %179 = arith.subf %0, %178 : vector<4x128xf32>
    %180 = vector.extract_strided_slice %1 {offsets = [5, 0], sizes = [1, 128], strides = [1, 1]} : vector<10x128xf32> to vector<1x128xf32>
    %181 = vector.extract_strided_slice %2 {offsets = [5, 0], sizes = [1, 128], strides = [1, 1]} : vector<10x128xf32> to vector<1x128xf32>
    %182 = arith.mulf %179, %179 : vector<4x128xf32>
    %183 = vector.broadcast %181 : vector<1x128xf32> to vector<4x128xf32>
    %184 = arith.mulf %183, %182 : vector<4x128xf32>
    %185 = vector.broadcast %180 : vector<1x128xf32> to vector<4x128xf32>
    %186 = arith.addf %185, %184 : vector<4x128xf32>
    %187 = arith.subf %186, %112 : vector<4x128xf32>
    %188 = math.exp %187 : vector<4x128xf32>
    %189 = arith.addf %176, %188 : vector<4x128xf32>
    %190 = vector.extract_strided_slice %3 {offsets = [6, 0], sizes = [1, 128], strides = [1, 1]} : vector<10x128xf32> to vector<1x128xf32>
    %191 = vector.broadcast %190 : vector<1x128xf32> to vector<4x128xf32>
    %192 = arith.subf %0, %191 : vector<4x128xf32>
    %193 = vector.extract_strided_slice %1 {offsets = [6, 0], sizes = [1, 128], strides = [1, 1]} : vector<10x128xf32> to vector<1x128xf32>
    %194 = vector.extract_strided_slice %2 {offsets = [6, 0], sizes = [1, 128], strides = [1, 1]} : vector<10x128xf32> to vector<1x128xf32>
    %195 = arith.mulf %192, %192 : vector<4x128xf32>
    %196 = vector.broadcast %194 : vector<1x128xf32> to vector<4x128xf32>
    %197 = arith.mulf %196, %195 : vector<4x128xf32>
    %198 = vector.broadcast %193 : vector<1x128xf32> to vector<4x128xf32>
    %199 = arith.addf %198, %197 : vector<4x128xf32>
    %200 = arith.subf %199, %112 : vector<4x128xf32>
    %201 = math.exp %200 : vector<4x128xf32>
    %202 = arith.addf %189, %201 : vector<4x128xf32>
    %203 = vector.extract_strided_slice %3 {offsets = [7, 0], sizes = [1, 128], strides = [1, 1]} : vector<10x128xf32> to vector<1x128xf32>
    %204 = vector.broadcast %203 : vector<1x128xf32> to vector<4x128xf32>
    %205 = arith.subf %0, %204 : vector<4x128xf32>
    %206 = vector.extract_strided_slice %1 {offsets = [7, 0], sizes = [1, 128], strides = [1, 1]} : vector<10x128xf32> to vector<1x128xf32>
    %207 = vector.extract_strided_slice %2 {offsets = [7, 0], sizes = [1, 128], strides = [1, 1]} : vector<10x128xf32> to vector<1x128xf32>
    %208 = arith.mulf %205, %205 : vector<4x128xf32>
    %209 = vector.broadcast %207 : vector<1x128xf32> to vector<4x128xf32>
    %210 = arith.mulf %209, %208 : vector<4x128xf32>
    %211 = vector.broadcast %206 : vector<1x128xf32> to vector<4x128xf32>
    %212 = arith.addf %211, %210 : vector<4x128xf32>
    %213 = arith.subf %212, %112 : vector<4x128xf32>
    %214 = math.exp %213 : vector<4x128xf32>
    %215 = arith.addf %202, %214 : vector<4x128xf32>
    %216 = vector.extract_strided_slice %3 {offsets = [8, 0], sizes = [1, 128], strides = [1, 1]} : vector<10x128xf32> to vector<1x128xf32>
    %217 = vector.broadcast %216 : vector<1x128xf32> to vector<4x128xf32>
    %218 = arith.subf %0, %217 : vector<4x128xf32>
    %219 = vector.extract_strided_slice %1 {offsets = [8, 0], sizes = [1, 128], strides = [1, 1]} : vector<10x128xf32> to vector<1x128xf32>
    %220 = vector.extract_strided_slice %2 {offsets = [8, 0], sizes = [1, 128], strides = [1, 1]} : vector<10x128xf32> to vector<1x128xf32>
    %221 = arith.mulf %218, %218 : vector<4x128xf32>
    %222 = vector.broadcast %220 : vector<1x128xf32> to vector<4x128xf32>
    %223 = arith.mulf %222, %221 : vector<4x128xf32>
    %224 = vector.broadcast %219 : vector<1x128xf32> to vector<4x128xf32>
    %225 = arith.addf %224, %223 : vector<4x128xf32>
    %226 = arith.subf %225, %112 : vector<4x128xf32>
    %227 = math.exp %226 : vector<4x128xf32>
    %228 = arith.addf %215, %227 : vector<4x128xf32>
    %229 = vector.extract_strided_slice %3 {offsets = [9, 0], sizes = [1, 128], strides = [1, 1]} : vector<10x128xf32> to vector<1x128xf32>
    %230 = vector.broadcast %229 : vector<1x128xf32> to vector<4x128xf32>
    %231 = arith.subf %0, %230 : vector<4x128xf32>
    %232 = vector.extract_strided_slice %1 {offsets = [9, 0], sizes = [1, 128], strides = [1, 1]} : vector<10x128xf32> to vector<1x128xf32>
    %233 = vector.extract_strided_slice %2 {offsets = [9, 0], sizes = [1, 128], strides = [1, 1]} : vector<10x128xf32> to vector<1x128xf32>
    %234 = arith.mulf %231, %231 : vector<4x128xf32>
    %235 = vector.broadcast %233 : vector<1x128xf32> to vector<4x128xf32>
    %236 = arith.mulf %235, %234 : vector<4x128xf32>
    %237 = vector.broadcast %232 : vector<1x128xf32> to vector<4x128xf32>
    %238 = arith.addf %237, %236 : vector<4x128xf32>
    %239 = arith.subf %238, %112 : vector<4x128xf32>
    %240 = math.exp %239 : vector<4x128xf32>
    %241 = arith.addf %228, %240 : vector<4x128xf32>
    %242 = math.log %241 : vector<4x128xf32>
    %243 = arith.addf %112, %242 : vector<4x128xf32>
    %c0_7 = arith.constant 0 : index
    %c0_8 = arith.constant 0 : index
    %244 = vector.load %arg5[%c0_7, %c0_8] : memref<4x128xf32, #tpu.memory_space<vmem>>, vector<4x128xf32>
    tpu.vector_store %arg5[%c0_7, %c0_8], %243 {strides = array<i32>} : memref<4x128xf32, #tpu.memory_space<vmem>>, vector<4x128xf32>,
    return
  }
  func.func @transform_0(%arg0: i32) -> (i32, i32) {
    %c0_i32 = arith.constant 0 : i32
    %c0_i32_0 = arith.constant 0 : i32
    %c0_i32_1 = arith.constant 0 : i32
    return %c0_i32, %c0_i32_0 : i32, i32
  }
  func.func @transform_1(%arg0: i32) -> (i32, i32) {
    %c0_i32 = arith.constant 0 : i32
    %c0_i32_0 = arith.constant 0 : i32
    %c0_i32_1 = arith.constant 0 : i32
    return %c0_i32, %c0_i32_0 : i32, i32
  }
  func.func @transform_2(%arg0: i32) -> (i32, i32) {
    %c0_i32 = arith.constant 0 : i32
    %c0_i32_0 = arith.constant 0 : i32
    %c0_i32_1 = arith.constant 0 : i32
    return %c0_i32, %c0_i32_0 : i32, i32
  }
  func.func @transform_3(%arg0: i32) -> (i32, i32) {
    %c0_i32 = arith.constant 0 : i32
    %c0_i32_0 = arith.constant 0 : i32
    return %arg0, %c0_i32 : i32, i32
  }
  func.func @transform_4(%arg0: i32) -> (i32, i32) {
    %c0_i32 = arith.constant 0 : i32
    %c0_i32_0 = arith.constant 0 : i32
    return %arg0, %c0_i32 : i32, i32
  }
}

</mosaic_0001>

<bundles_post_ra>
// kernel: tile.19
= control target key start
LH: loop header
LB: loop body
LE: loop exit
PB: predicated region body
PF: predicated region fallthrough
CT: control target
= control target key end

     0   :  { %vm44_vm0 = vcmask 1047556   ;;  %s125_s26 = smov 64   ;;  %s126_s27 = smov 32   ;;  %vm46_vm1 = vcmask 261120   ;;  %vm62_vm2 = vcmask 1048320   ;;  %vm80_vm3 = vcmask 785920   ;;  %s195_s0 = inlined_call_operand.vmem [shape: f32[10,4,32], index: 0, kind: input, shape index: {}]   ;;  %s196_s1 = inlined_call_operand.vmem [shape: f32[10,128], index: 1, kind: output, shape index: {}]  }
   0x1   :  { %v110_v0 = vld [vmem:[%s195_s0 + $0x1c] sm:$0xf]  ;;  %v111_v1 = vld [vmem:[%s195_s0 + $0x18] sm:$0xf]  ;;  %v112_v2 = vld [vmem:[%s195_s0 + $0x14] sm:$0xf] }
   0x2   :  { %15 = vst [vmem:[#allocation0 + $0x38] sm:$0xf] %v110_v0  ;;  %v113_v3 = vld [vmem:[%s195_s0 + $0x10] sm:$0xf]  ;;  %v114_v4 = vld [vmem:[%s195_s0 + $0xc] sm:$0xf] }
   0x3   :  { %19 = vst [vmem:[#allocation0 + $0x30] sm:$0xf] %v111_v1  ;;  %v115_v5 = vld [vmem:[%s195_s0 + $0x8] sm:$0xf]  ;;  %v116_v6 = vld [vmem:[%s195_s0 + $0x4] sm:$0xf] }
   0x4   :  { %23 = vst [vmem:[#allocation0 + $0x28] sm:$0xf] %v112_v2  ;;  %v40_v7 = vld [vmem:[%s195_s0] sm:$0xf]  ;;  %v108_v8 = vld [vmem:[%s195_s0 + $0x24] sm:$0xf] }
   0x5   :  { %27 = vst [vmem:[#allocation0 + $0x20] sm:$0xf] %v113_v3  ;;  %v109_v9 = vld [vmem:[%s195_s0 + $0x20] sm:$0xf]  ;;  %s124_s0 = smov 96   ;;  %s65_s28 = smov 3 }
   0x6   :  { %31 = vst [vmem:[#allocation0 + $0x18] sm:$0xf] %v114_v4  ;;  %s83_s29 = smov 3  ;;  %s101_s30 = smov 3  ;;  %vm98_vm4 = vcmask 523520  }
   0x7   :  { %35 = vst [vmem:[#allocation0 + $0x10] sm:$0xf] %v115_v5  ;;  %s49_s4 = smov 3 }
   0x8   :  { %39 = vst [vmem:[#allocation0 + $0x8] sm:$0xf] %v116_v6 }
   0x9   :  { %41 = vst [vmem:[#allocation0] sm:$0xf] %v40_v7 }
   0xa   :  { %7 = vst [vmem:[#allocation0 + $0x48] sm:$0xf] %v108_v8 }
   0xb   :  { %11 = vst [vmem:[#allocation0 + $0x40] sm:$0xf] %v109_v9 }
   0xc   :  { %v57_v10 = vld [vmem:[#allocation0 + $0x3] ss:$8 sm:$0xf0]   ;;  %v75_v11 = vld [vmem:[#allocation0 + $0x2] ss:$8 sm:$0xf0]  }
   0xd   :  { %v93_v12 = vld [vmem:[#allocation0 + $0x1] ss:$8 sm:$0xf0]   ;;  %v43_v23 = vld [vmem:[#allocation0] ss:$8 sm:$0xf0]  }
  0x10   :  { %v55_v13 = vld [vmem:[#allocation0 + $0x3] ss:$8 sm:$0xf]   ;;  %v73_v14 = vld [vmem:[#allocation0 + $0x2] ss:$8 sm:$0xf]  }
  0x11   :  { %v59_v15 = vsel %vm44_vm0, %v57_v10, %v55_v13  ;;  %v77_v16 = vsel %vm44_vm0, %v75_v11, %v73_v14  ;;  %v91_v17 = vld [vmem:[#allocation0 + $0x1] ss:$8 sm:$0xf]   ;;  %v42_v22 = vld [vmem:[#allocation0] ss:$8 sm:$0xf]  }
  0x12   :  { %60 = vrot.lane.b32.xlu0 %v59_v15, %s124_s0  ;;  %78 = vrot.lane.b32.xlu1 %v77_v16, %s125_s26  ;;  %v95_v18 = vsel %vm44_vm0, %v93_v12, %v91_v17  ;;  %v66_v19 = vld [vmem:[#allocation0 + $0x43] ss:$8 sm:%s65_s28]   ;;  %v84_v20 = vld [vmem:[#allocation0 + $0x42] ss:$8 sm:%s83_s29]   ;;  %v45_v24 = vsel %vm44_vm0, %v43_v23, %v42_v22 }
  0x13   :  { %96 = vrot.lane.b32.xlu2 %v95_v18, %s126_s27  ;;  %v102_v21 = vld [vmem:[#allocation0 + $0x41] ss:$8 sm:%s101_s30]   ;;  %47 = vst.msk [vmem:[%s196_s1] sm:$0xff] %vm46_vm1, %v45_v24   ;;  %v50_v25 = vld [vmem:[#allocation0 + $0x40] ss:$8 sm:%s49_s4]  }
  0x14   :  { %117 = vst.msk [vmem:[%s196_s1 + $0x8] sm:$0x3] %vm46_vm1, %v50_v25  }
  0x1a   :  { %67 = vrot.lane.b32.xlu0 %v66_v19, %s124_s0  ;;  %85 = vrot.lane.b32.xlu1 %v84_v20, %s125_s26 }
  0x1b   :  { %103 = vrot.lane.b32.xlu2 %v102_v21, %s126_s27 }
  0x6d   :  { %v97_v26 = vpop.permute.xlu2 %96  }
  0x75   :  { %v104_v27 = vpop.permute.xlu2 %103  }
  0x84   :  { %v61_v28 = vpop.permute.xlu0 %60   ;;  %v79_v29 = vpop.permute.xlu1 %78  }
  0x85   :  { %63 = vst.msk [vmem:[%s196_s1] sm:$0xff] %vm62_vm2, %v61_v28  }
  0x86   :  { %81 = vst.msk [vmem:[%s196_s1] sm:$0xff] %vm80_vm3, %v79_v29  }
  0x87   :  { %99 = vst.msk [vmem:[%s196_s1] sm:$0xff] %vm98_vm4, %v97_v26  }
  0x8c   :  { %v68_v30 = vpop.permute.xlu0 %67   ;;  %v86_v31 = vpop.permute.xlu1 %85  }
  0x8d   :  { %118 = vst.msk [vmem:[%s196_s1 + $0x8] sm:$0x3] %vm62_vm2, %v68_v30  }
  0x8e   :  { %119 = vst.msk [vmem:[%s196_s1 + $0x8] sm:$0x3] %vm80_vm3, %v86_v31  }
  0x8f   :  { %120 = vst.msk [vmem:[%s196_s1 + $0x8] sm:$0x3] %vm98_vm4, %v104_v27  }

// kernel: gmm_log_prob.1
= control target key start
LH: loop header
LB: loop body
LE: loop exit
PB: predicated region body
PF: predicated region fallthrough
CT: control target
= control target key end

     0   :  { %s253_s0 = inlined_call_operand.vmem [shape: f32[10,128], index: 0, kind: input, shape index: {}]   ;;  %s254_s1 = inlined_call_operand.vmem [shape: f32[10,128], index: 1, kind: input, shape index: {}]   ;;  %s255_s2 = inlined_call_operand.vmem [shape: f32[10,128], index: 2, kind: input, shape index: {}]   ;;  %s256_s3 = inlined_call_operand.vmem [shape: f32[4,128], index: 3, kind: input, shape index: {}]   ;;  %s257_s4 = inlined_call_operand.vmem [shape: f32[4,128], index: 4, kind: output, shape index: {}]  }
   0x1   :  { %v200_v0 = vld [vmem:[%s253_s0] sm:$0xff]  ;;  %v23_v41 = vld [vmem:[%s255_s2 + $0x8] sm:$0x3] }
   0x2   :  { %v205_v1 = vld [vmem:[%s256_s3] sm:$0xf]  ;;  %v29_v4 = vperm.slane %v200_v0, 0  ;;  %v36_v8 = vperm.slane %v200_v0, 1  ;;  %v44_v15 = vperm.slane %v200_v0, 2  ;;  %v52_v19 = vperm.slane %v200_v0, 3 }
   0x3   :  { %v210_v2 = vld [vmem:[%s254_s1] sm:$0xff]  ;;  %v60_v28 = vperm.slane %v200_v0, 4  ;;  %v68_v40 = vperm.slane %v200_v0, 5  ;;  %v21_v50 = vld [vmem:[%s254_s1 + $0x8] sm:$0x3]  ;;  %v76_v53 = vperm.slane %v200_v0, 6 }
   0x4   :  { %v22_v3 = vld [vmem:[%s255_s2] sm:$0xff]  ;;  %v27_v6 = vperm.slane %v210_v2, 0  ;;  %v34_v9 = vperm.slane %v210_v2, 1  ;;  %v42_v11 = vperm.slane %v210_v2, 2  ;;  %v50_v16 = vperm.slane %v210_v2, 3 }
   0x5   :  { %v24_v5 = vperm.slane %v22_v3, 0  ;;  %v31_v7 = vperm.slane %v22_v3, 1  ;;  %v39_v10 = vperm.slane %v22_v3, 2  ;;  %v47_v12 = vperm.slane %v22_v3, 3  ;;  %v19_v54 = vld [vmem:[%s253_s0 + $0x8] sm:$0x3] }
   0x6   :  { %v55_v20 = vperm.slane %v22_v3, 4  ;;  %v58_v23 = vperm.slane %v210_v2, 4  ;;  %v63_v24 = vperm.slane %v22_v3, 5  ;;  %v66_v32 = vperm.slane %v210_v2, 5 }
   0x7   :  { %v25_v13 = vsub.f32 %v205_v1, %v24_v5  ;;  %v32_v14 = vsub.f32 %v205_v1, %v31_v7  ;;  %v40_v17 = vsub.f32 %v205_v1, %v39_v10  ;;  %v48_v18 = vsub.f32 %v205_v1, %v47_v12 }
   0x8   :  { %v56_v27 = vsub.f32 %v205_v1, %v55_v20  ;;  %v64_v31 = vsub.f32 %v205_v1, %v63_v24  ;;  %v71_v36 = vperm.slane %v22_v3, 6  ;;  %v74_v45 = vperm.slane %v210_v2, 6 }
   0x9   :  { %v26_v21 = vmul.f32 %v25_v13, %v25_v13  ;;  %v33_v22 = vmul.f32 %v32_v14, %v32_v14  ;;  %v41_v25 = vmul.f32 %v40_v17, %v40_v17  ;;  %v49_v26 = vmul.f32 %v48_v18, %v48_v18 }
   0xa   :  { %v57_v35 = vmul.f32 %v56_v27, %v56_v27  ;;  %v65_v39 = vmul.f32 %v64_v31, %v64_v31  ;;  %v72_v44 = vsub.f32 %v205_v1, %v71_v36  ;;  %v79_v49 = vperm.slane %v22_v3, 7 }
   0xb   :  { %v28_v29 = vmul.f32 %v27_v6, %v26_v21  ;;  %v35_v30 = vmul.f32 %v34_v9, %v33_v22  ;;  %v43_v33 = vmul.f32 %v42_v11, %v41_v25  ;;  %v51_v34 = vmul.f32 %v50_v16, %v49_v26 }
   0xc   :  { %v59_v43 = vmul.f32 %v58_v23, %v57_v35  ;;  %v67_v48 = vmul.f32 %v66_v32, %v65_v39  ;;  %v73_v52 = vmul.f32 %v72_v44, %v72_v44  ;;  %v80_v56 = vsub.f32 %v205_v1, %v79_v49 }
   0xd   :  { %v30_v37 = vadd.f32 %v29_v4, %v28_v29  ;;  %v37_v38 = vadd.f32 %v36_v8, %v35_v30  ;;  %v45_v42 = vadd.f32 %v44_v15, %v43_v33  ;;  %v53_v47 = vadd.f32 %v52_v19, %v51_v34 }
   0xe   :  { %v61_v51 = vadd.f32 %v60_v28, %v59_v43  ;;  %v82_v57 = vperm.slane %v210_v2, 7  ;;  %v87_v58 = vperm.slane %v23_v41, 0  ;;  %v69_v59 = vadd.f32 %v68_v40, %v67_v48 }
   0xf   :  { %v38_v46 = vmax.f32 %v30_v37, %v37_v38  ;;  %v75_v60 = vmul.f32 %v74_v45, %v73_v52  ;;  %v84_v61 = vperm.slane %v200_v0, 7  ;;  %v95_v62 = vperm.slane %v23_v41, 1 }
  0x10   :  { %v81_v3 = vmul.f32 %v80_v56, %v80_v56  ;;  %v88_v4 = vsub.f32 %v205_v1, %v87_v58  ;;  %v90_v5 = vperm.slane %v21_v50, 0  ;;  %v92_v6 = vperm.slane %v19_v54, 0 }
  0x11   :  { %v46_v55 = vmax.f32 %v38_v46, %v45_v42  ;;  %v96_v7 = vsub.f32 %v205_v1, %v95_v62  ;;  %v98_v8 = vperm.slane %v21_v50, 1  ;;  %v77_v10 = vadd.f32 %v76_v53, %v75_v60 }
  0x12   :  { %v83_v11 = vmul.f32 %v82_v57, %v81_v3  ;;  %v89_v12 = vmul.f32 %v88_v4, %v88_v4  ;;  %v100_v16 = vperm.slane %v19_v54, 1 }
  0x13   :  { %v54_v63 = vmax.f32 %v46_v55, %v53_v47  ;;  %v97_v2 = vmul.f32 %v96_v7, %v96_v7 }
  0x14   :  { %v85_v14 = vadd.f32 %v84_v61, %v83_v11  ;;  %v91_v15 = vmul.f32 %v90_v5, %v89_v12 }
  0x15   :  { %v62_v9 = vmax.f32 %v54_v63, %v61_v51  ;;  %v99_v0 = vmul.f32 %v98_v8, %v97_v2 }
  0x16   :  { %v93_v18 = vadd.f32 %v92_v6, %v91_v15 }
  0x17   :  { %v70_v13 = vmax.f32 %v62_v9, %v69_v59  ;;  %v101_v20 = vadd.f32 %v100_v16, %v99_v0 }
  0x19   :  { %v78_v17 = vmax.f32 %v70_v13, %v77_v10 }
  0x1b   :  { %v86_v19 = vmax.f32 %v78_v17, %v85_v14 }
  0x1d   :  { %v94_v21 = vmax.f32 %v86_v19, %v93_v18 }
  0x1f   :  { %v102_v22 = vmax.f32 %v94_v21, %v101_v20 }
  0x21   :  { %v103_v23 = vsub.f32 %v30_v37, %v102_v22  ;;  %v106_v24 = vsub.f32 %v37_v38, %v102_v22  ;;  %v110_v1 = vsub.f32 %v45_v42, %v102_v22  ;;  %v114_v25 = vsub.f32 %v53_v47, %v102_v22 }
  0x22   :  { %v118_v26 = vsub.f32 %v61_v51, %v102_v22  ;;  %v122_v31 = vsub.f32 %v69_v59, %v102_v22  ;;  %v126_v33 = vsub.f32 %v77_v10, %v102_v22  ;;  %v130_v35 = vsub.f32 %v85_v14, %v102_v22 }
  0x23   :  { %v104_v27 = vmul.f32 1.442695, %v103_v23  ;;  %v107_v28 = vmul.f32 1.442695, %v106_v24  ;;  %v111_v29 = vmul.f32 1.442695, %v110_v1  ;;  %v134_v37 = vsub.f32 %v93_v18, %v102_v22 }
  0x24   :  { %v115_v30 = vmul.f32 1.442695, %v114_v25  ;;  %v119_v32 = vmul.f32 1.442695, %v118_v26  ;;  %v123_v34 = vmul.f32 1.442695, %v122_v31  ;;  %v138_v41 = vsub.f32 %v101_v20, %v102_v22 }
  0x25   :  { %150 = vpow2.f32 %v104_v27  ;;  %v127_v36 = vmul.f32 1.442695, %v126_v33  ;;  %v131_v40 = vmul.f32 1.442695, %v130_v35  ;;  %v135_v45 = vmul.f32 1.442695, %v134_v37 }
  0x26   :  { %152 = vpow2.f32 %v107_v28  ;;  %v139_v48 = vmul.f32 1.442695, %v138_v41 }
  0x27   :  { %154 = vpow2.f32 %v111_v29 }
  0x28   :  { %156 = vpow2.f32 %v115_v30 }
  0x29   :  { %158 = vpow2.f32 %v119_v32 }
  0x2a   :  { %160 = vpow2.f32 %v123_v34 }
  0x2b   :  { %v151_v38 = vpop.eup %150  ;;  %162 = vpow2.f32 %v127_v36 }
  0x2c   :  { %v153_v39 = vpop.eup %152  ;;  %164 = vpow2.f32 %v131_v40 }
  0x2d   :  { %v155_v42 = vpop.eup %154  ;;  %v109_v43 = vadd.f32 %v153_v39, %v151_v38  ;;  %166 = vpow2.f32 %v135_v45 }
  0x2e   :  { %v157_v44 = vpop.eup %156  ;;  %168 = vpow2.f32 %v139_v48 }
  0x2f   :  { %v113_v46 = vadd.f32 %v155_v42, %v109_v43  ;;  %v159_v47 = vpop.eup %158 }
  0x30   :  { %v161_v50 = vpop.eup %160 }
  0x31   :  { %v117_v49 = vadd.f32 %v157_v44, %v113_v46  ;;  %v163_v52 = vpop.eup %162 }
  0x32   :  { %v165_v54 = vpop.eup %164 }
  0x33   :  { %v121_v51 = vadd.f32 %v159_v47, %v117_v49  ;;  %v167_v56 = vpop.eup %166 }
  0x34   :  { %v169_v58 = vpop.eup %168 }
  0x35   :  { %v125_v53 = vadd.f32 %v161_v50, %v121_v51 }
  0x37   :  { %v129_v55 = vadd.f32 %v163_v52, %v125_v53 }
  0x39   :  { %v133_v57 = vadd.f32 %v165_v54, %v129_v55 }
  0x3b   :  { %v137_v59 = vadd.f32 %v167_v56, %v133_v57 }
  0x3d   :  { %v141_v60 = vadd.f32 %v169_v58, %v137_v59 }
  0x3f   :  { %170 = vlog2.f32 %v141_v60 }
  0x45   :  { %v171_v61 = vpop.eup %170 }
  0x46   :  { %v143_v62 = vmul.f32 0.6931472, %v171_v61 }
  0x48   :  { %v144_v63 = vadd.f32 %v143_v62, %v102_v22 }
  0x4a   :  { %145 = vst [vmem:[%s257_s4] sm:$0xf] %v144_v63 }

</bundles_post_ra>
